<compile_context>
chip_gen: v7x
topology: tpu7x:2x2x1
jax: 0.10.0
libtpu: 0.0.40
codegen_flags: <defaults>
</compile_context>

<pallas_src>
import functools

import jax
import jax.numpy as jnp
from jax.experimental import pallas as pl
from jax.experimental.pallas import tpu as pltpu

_BIG = 1e30                                  # sentinel for masked max / min
_PAD_NORM = 1e30                             # squared-norm sentinel for padded candidates
_PAD_LABEL = int(jnp.iinfo(jnp.int32).min)   # label sentinel for padded rows (assumes no
                                             # real label equals INT32_MIN)

_VMEM_BUDGET = 44 * 1024 * 1024              # config-selection budget (fits v7x 64 MiB)
_VMEM_CAP = 56 * 1024 * 1024                 # hard cap for vmem_limit_bytes


def _round_up(x, m):
    return (x + m - 1) // m * m


def _vmem_estimate(tm, tn, n_pad, d_pad, itemsize, resident):
    """Conservative VMEM footprint estimate (bytes) for a given config."""
    f32 = 4
    b = 2 * tm * d_pad * itemsize                 # anchor rows, double-buffered
    if resident:
        b += 2 * d_pad * n_pad * itemsize         # resident X^T (2x buffer accounting)
        b += 2 * 2 * 8 * n_pad * f32              # resident norm/label rows
    else:
        b += 2 * d_pad * tn * itemsize            # streamed candidate block
        b += 2 * 2 * 8 * tn * f32
    b += 3 * 2 * tm * 128 * f32                   # sq_col, t_col, out (lane-padded)
    b += 2 * tm * 128 * f32                       # ap / an scratch
    b += 4 * tm * tn * f32                        # gram / d2 / select temporaries
    return b


def _triplet_kernel(x_ref, xt_ref, sqc_ref, sqr_ref, tcol_ref, trow_ref,
                    out_ref, ap_ref, an_ref, *, margin, tn, slice_cands):
    """One (TM, TN) tile of streaming batch-hard mining on squared distances."""
    j = pl.program_id(1)

    @pl.when(j == 0)
    def _init():
        ap_ref[...] = jnp.full(ap_ref.shape, -_BIG, dtype=jnp.float32)
        an_ref[...] = jnp.full(an_ref.shape, _BIG, dtype=jnp.float32)

    if slice_cands:
        # Resident candidate operand: pick the j-th lane-aligned tile in VMEM.
        start = pl.multiple_of(j * tn, tn)
        xt = xt_ref[:, pl.ds(start, tn)]
        sqr = sqr_ref[:, pl.ds(start, tn)]
        trow = trow_ref[:, pl.ds(start, tn)]
    else:
        xt = xt_ref[...]
        sqr = sqr_ref[...]
        trow = trow_ref[...]

    # Gram tile on the MXU, operands in their (possibly bf16) dtype, f32 acc.
    gram = jnp.dot(x_ref[...], xt, preferred_element_type=jnp.float32)

    # Squared distance minus the per-anchor ||x_i||^2 term.  That term is
    # constant along each row, so max/min ordering is unchanged; the add,
    # the 1e-12 clamp and the sqrt are all deferred to the (TM,1) finalize.
    d2 = sqr - 2.0 * gram

    same = tcol_ref[...] == trow                                # (TM, TN) bool

    ap_ref[...] = jnp.maximum(
        ap_ref[...],
        jnp.max(jnp.where(same, d2, -_BIG), axis=1, keepdims=True))
    an_ref[...] = jnp.minimum(
        an_ref[...],
        jnp.min(jnp.where(same, _BIG, d2), axis=1, keepdims=True))

    @pl.when(j == pl.num_programs(1) - 1)
    def _finalize():
        sqc = sqc_ref[...]
        ap = jnp.sqrt(jnp.maximum(ap_ref[...] + sqc, 1e-12))
        an = jnp.sqrt(jnp.maximum(an_ref[...] + sqc, 1e-12))
        if margin == 0.0:
            # SoftMarginLoss(an - ap, 1) = log(1 + exp(ap - an)); stable softplus.
            z = ap - an
            out_ref[...] = jnp.maximum(z, 0.0) + jnp.log1p(jnp.exp(-jnp.abs(z)))
        else:
            # MarginRankingLoss(margin)(an, ap, 1) = max(ap - an + margin, 0)
            out_ref[...] = jnp.maximum(ap - an + margin, 0.0)


def triplet_loss(inputs, targets, *, margin=0.3, block_m=None, block_n=None,
                 resident=None, matmul_dtype=None):
    """Triplet loss with batch-hard mining (matches the PyTorch module forward).

    inputs:  (N, D) float features.
    targets: (N,)   integer class labels.
    matmul_dtype: optional dtype (e.g. jnp.bfloat16) for the MXU operands only
      (norms / elementwise math stay f32).  Deviates slightly from the f32
      reference; recommended on v5e.
    Returns a scalar float32 loss.
    """
    n, d = inputs.shape
    op_dtype = jnp.dtype(matmul_dtype) if matmul_dtype is not None else jnp.dtype(inputs.dtype)
    itemsize = op_dtype.itemsize
    d_pad = _round_up(d, 128)
    sub = 16 if itemsize < 4 else 8            # sublane packing for the matmul dtype

    # ---- tile / residency selection -------------------------------------
    if block_m is not None or block_n is not None:
        tm = int(block_m or block_n)
        tn = int(block_n or block_m)
        n_pad = _round_up(n, max(tm, tn))
        assert n_pad % tm == 0 and n_pad % tn == 0, "blocks must tile padded N"
        if resident is None:
            resident = _vmem_estimate(tm, tn, n_pad, d_pad, itemsize, True) <= _VMEM_BUDGET
    elif n <= 256:
        # Whole candidate set is tiny: keep it resident, and split the anchor
        # axis in two when possible so both v7x TensorCores get work.
        n_pad = _round_up(n, sub)
        tn = n_pad
        tm = n_pad // 2 if (n_pad // 2) % sub == 0 else n_pad
        resident = True if resident is None else resident
    else:
        tn = 256
        n_pad = _round_up(n, tn)
        tm = 256
        if resident is None:
            resident = _vmem_estimate(tm, tn, n_pad, d_pad, itemsize, True) <= _VMEM_BUDGET
        if not resident:
            # Streaming X^T: grow the anchor block so the re-stream factor
            # (~N/TM) shrinks, as long as it fits VMEM and >=2 anchor blocks.
            if n > 512 and _vmem_estimate(512, tn, _round_up(n, 512), d_pad,
                                          itemsize, False) <= _VMEM_BUDGET:
                tm = 512
                n_pad = _round_up(n, tm)

    slice_cands = bool(resident) and tn != n_pad

    # ---- hoisted wrapper prep (single padded pass over X) ----------------
    x_p = jnp.pad(inputs, ((0, n_pad - n), (0, d_pad - d)))
    x_mm = x_p.astype(op_dtype) if matmul_dtype is not None else x_p
    xt_mm = x_mm.T                                        # (D_pad, N_pad)

    sq = jnp.sum(x_p.astype(jnp.float32) ** 2, axis=1)    # (N_pad,) f32; padded rows = 0
    valid = jnp.arange(n_pad) < n
    sq_col = sq.reshape(n_pad, 1)
    sq_row = jnp.where(valid, sq, _PAD_NORM).reshape(1, n_pad)

    t_pad = jnp.full((n_pad,), _PAD_LABEL, dtype=jnp.int32)
    t_pad = t_pad.at[:n].set(targets.astype(jnp.int32))
    t_col = t_pad.reshape(n_pad, 1)
    t_row = t_pad.reshape(1, n_pad)

    # ---- specs ------------------------------------------------------------
    if resident:
        xt_spec = pl.BlockSpec((d_pad, n_pad), lambda i, j: (0, 0))   # fetched once
        sqr_spec = pl.BlockSpec((1, n_pad), lambda i, j: (0, 0))
        trow_spec = pl.BlockSpec((1, n_pad), lambda i, j: (0, 0))
    else:
        xt_spec = pl.BlockSpec((d_pad, tn), lambda i, j: (0, j))
        sqr_spec = pl.BlockSpec((1, tn), lambda i, j: (0, j))
        trow_spec = pl.BlockSpec((1, tn), lambda i, j: (0, j))

    grid = (n_pad // tm, n_pad // tn)

    est = _vmem_estimate(tm, tn, n_pad, d_pad, itemsize, resident)
    vmem_limit = int(min(max(int(est * 1.25), 32 * 1024 * 1024), _VMEM_CAP))

    if resident:
        x_bytes = 2 * n_pad * d_pad * itemsize
    else:
        x_bytes = (grid[0] + 1) * n_pad * d_pad * itemsize
    cost = pl.CostEstimate(
        flops=2 * n_pad * n_pad * d_pad + 6 * n_pad * n_pad,
        transcendentals=3 * n_pad,                       # sqrt/exp only at finalize
        bytes_accessed=int(x_bytes + 8 * 4 * n_pad),
    )

    kernel = functools.partial(_triplet_kernel, margin=float(margin), tn=tn,
                               slice_cands=slice_cands)

    per_anchor = pl.pallas_call(
        kernel,
        out_shape=jax.ShapeDtypeStruct((n_pad, 1), jnp.float32),
        grid=grid,
        in_specs=[
            pl.BlockSpec((tm, d_pad), lambda i, j: (i, 0)),   # anchor rows
            xt_spec,                                          # candidates^T
            pl.BlockSpec((tm, 1), lambda i, j: (i, 0)),       # ||x||^2 column
            sqr_spec,                                         # ||x||^2 row
            pl.BlockSpec((tm, 1), lambda i, j: (i, 0)),       # labels column
            trow_spec,                                        # labels row
        ],
        out_specs=pl.BlockSpec((tm, 1), lambda i, j: (i, 0)),
        scratch_shapes=[
            pltpu.VMEM((tm, 1), jnp.float32),   # running hard-positive max (squared)
            pltpu.VMEM((tm, 1), jnp.float32),   # running hard-negative min (squared)
        ],
        compiler_params=pltpu.CompilerParams(
            dimension_semantics=("parallel", "arbitrary"),
            vmem_limit_bytes=vmem_limit,
        ),
        cost_estimate=cost,
    )(x_mm, xt_mm, sq_col, sq_row, t_col, t_row)

    # Tiny final reduction over the real anchors (padded anchors dropped).
    return jnp.mean(per_anchor[:n, 0])


def _reference_loss(inputs, targets, margin=0.3):
    # Pure-JAX reference mirroring the PyTorch module.
    x = inputs.astype(jnp.float32)
    sq = jnp.sum(x * x, axis=1, keepdims=True)
    dist = sq + sq.T - 2.0 * (x @ x.T)
    dist = jnp.sqrt(jnp.maximum(dist, 1e-12))
    mask = targets[:, None] == targets[None, :]
    big = 1e30
    dist_ap = jnp.max(jnp.where(mask, dist, -big), axis=1)
    dist_an = jnp.min(jnp.where(mask, big, dist), axis=1)
    if margin == 0.0:
        z = dist_ap - dist_an
        return jnp.mean(jnp.maximum(z, 0.0) + jnp.log1p(jnp.exp(-jnp.abs(z))))
    return jnp.mean(jnp.maximum(dist_ap - dist_an + margin, 0.0))


if __name__ == "__main__":
    key = jax.random.PRNGKey(0)
    k1, k2 = jax.random.split(key)

    # Small case matching the module spec: batch=8 (4 ids x 2), feat_dim=32.
    n, d = 8, 32
    x = jax.random.normal(k1, (n, d), dtype=jnp.float32)
    t = jnp.array([0, 0, 1, 1, 2, 2, 3, 3], dtype=jnp.int32)

    loss = triplet_loss(x, t, margin=0.3)
    jax.block_until_ready(loss)
    ref = _reference_loss(x, t, margin=0.3)
    assert jnp.allclose(loss, ref, atol=1e-5, rtol=1e-5), (loss, ref)

    # Soft-margin path (margin == 0).
    loss0 = triplet_loss(x, t, margin=0.0)
    jax.block_until_ready(loss0)
    ref0 = _reference_loss(x, t, margin=0.0)
    assert jnp.allclose(loss0, ref0, atol=1e-5, rtol=1e-5), (loss0, ref0)

    # Resident X^T with in-kernel tile slicing: 2x2 grid, positives span blocks.
    n2, d2 = 256, 96
    x2 = jax.random.normal(k2, (n2, d2), dtype=jnp.float32)
    t2 = (jnp.arange(n2, dtype=jnp.int32) % 64)
    ref2 = _reference_loss(x2, t2, margin=0.3)

    loss2 = triplet_loss(x2, t2, margin=0.3, block_m=128, block_n=128, resident=True)
    jax.block_until_ready(loss2)
    assert jnp.allclose(loss2, ref2, atol=1e-4, rtol=1e-4), (loss2, ref2)

    # Streaming fallback path (X^T re-streamed per anchor block).
    loss3 = triplet_loss(x2, t2, margin=0.3, block_m=128, block_n=128, resident=False)
    jax.block_until_ready(loss3)
    assert jnp.allclose(loss3, ref2, atol=1e-4, rtol=1e-4), (loss3, ref2)

    print("KERNEL_OK")
</pallas_src>

<mosaic_0001>
module attributes {stable_mosaic.version = 11 : i64} {
  func.func @_triplet_kernel(%arg0: i32, %arg1: i32, %arg2: memref<8x128xf32, #tpu.memory_space<vmem>>, %arg3: memref<128x8xf32, #tpu.memory_space<vmem>>, %arg4: memref<8x1xf32, #tpu.memory_space<vmem>>, %arg5: memref<1x8xf32, #tpu.memory_space<vmem>>, %arg6: memref<8x1xi32, #tpu.memory_space<vmem>>, %arg7: memref<1x8xi32, #tpu.memory_space<vmem>>, %arg8: memref<8x1xf32, #tpu.memory_space<vmem>>, %arg9: memref<8x1xf32, #tpu.memory_space<vmem>>, %arg10: memref<8x1xf32, #tpu.memory_space<vmem>>) attributes {dimension_semantics = [#tpu.dimension_semantics<parallel>, #tpu.dimension_semantics<arbitrary>], iteration_bounds = array<i64: 1, 1>, scalar_prefetch = 0 : i64, scratch_operands = 2 : i64, tpu.core_type = #tpu.core_type<tc>, window_params = [{transform_indices = @transform_0, window_bounds = array<i64: 8, 128>}, {pipeline_mode = #tpu.pipeline_mode<synchronous>, transform_indices = @transform_1, window_bounds = array<i64: 128, 8>}, {transform_indices = @transform_2, window_bounds = array<i64: 8, 1>}, {pipeline_mode = #tpu.pipeline_mode<synchronous>, transform_indices = @transform_3, window_bounds = array<i64: 1, 8>}, {transform_indices = @transform_4, window_bounds = array<i64: 8, 1>}, {pipeline_mode = #tpu.pipeline_mode<synchronous>, transform_indices = @transform_5, window_bounds = array<i64: 1, 8>}, {transform_indices = @transform_6, window_bounds = array<i64: 8, 1>}]} {
    %c0_i32 = arith.constant 0 : i32
    %0 = arith.cmpi eq, %arg1, %c0_i32 : i32
    %1 = arith.extui %0 : i1 to i32
    %c0_i32_0 = arith.constant 0 : i32
    %2 = arith.cmpi ne, %1, %c0_i32_0 : i32
    scf.if %2 {
      %cst_25 = arith.constant -1.000000e+30 : f32
      %33 = vector.broadcast %cst_25 : f32 to vector<8x1xf32>
      %c0_26 = arith.constant 0 : index
      %c0_27 = arith.constant 0 : index
      %34 = vector.load %arg9[%c0_26, %c0_27] : memref<8x1xf32, #tpu.memory_space<vmem>>, vector<8x1xf32>
      tpu.vector_store %arg9[%c0_26, %c0_27], %33 {strides = array<i32>} : memref<8x1xf32, #tpu.memory_space<vmem>>, vector<8x1xf32>,
      %cst_28 = arith.constant 1.000000e+30 : f32
      %35 = vector.broadcast %cst_28 : f32 to vector<8x1xf32>
      %c0_29 = arith.constant 0 : index
      %c0_30 = arith.constant 0 : index
      %36 = vector.load %arg10[%c0_29, %c0_30] : memref<8x1xf32, #tpu.memory_space<vmem>>, vector<8x1xf32>
      tpu.vector_store %arg10[%c0_29, %c0_30], %35 {strides = array<i32>} : memref<8x1xf32, #tpu.memory_space<vmem>>, vector<8x1xf32>,
    } else {
    }
    %c0 = arith.constant 0 : index
    %c0_1 = arith.constant 0 : index
    %3 = vector.load %arg3[%c0, %c0_1] : memref<128x8xf32, #tpu.memory_space<vmem>>, vector<128x8xf32>
    %c0_2 = arith.constant 0 : index
    %c0_3 = arith.constant 0 : index
    %4 = vector.load %arg5[%c0_2, %c0_3] : memref<1x8xf32, #tpu.memory_space<vmem>>, vector<1x8xf32>
    %c0_4 = arith.constant 0 : index
    %c0_5 = arith.constant 0 : index
    %5 = vector.load %arg7[%c0_4, %c0_5] : memref<1x8xi32, #tpu.memory_space<vmem>>, vector<1x8xi32>
    %c0_6 = arith.constant 0 : index
    %c0_7 = arith.constant 0 : index
    %6 = vector.load %arg2[%c0_6, %c0_7] : memref<8x128xf32, #tpu.memory_space<vmem>>, vector<8x128xf32>
    %cst = arith.constant dense<0.000000e+00> : vector<8x8xf32>
    %7 = tpu.matmul %6, %3, %cst {dimension_numbers = #tpu.dot_dimension_numbers<[1], [0], [0], [1], [0, 0, 1, 1], [], []>} : vector<8x128xf32>, vector<128x8xf32>, vector<8x8xf32> -> vector<8x8xf32>
    %cst_8 = arith.constant 2.000000e+00 : f32
    %8 = vector.broadcast %cst_8 : f32 to vector<8x8xf32>
    %9 = arith.mulf %8, %7 : vector<8x8xf32>
    %10 = vector.broadcast %4 : vector<1x8xf32> to vector<8x8xf32>
    %11 = arith.subf %10, %9 : vector<8x8xf32>
    %c0_9 = arith.constant 0 : index
    %c0_10 = arith.constant 0 : index
    %12 = vector.load %arg6[%c0_9, %c0_10] : memref<8x1xi32, #tpu.memory_space<vmem>>, vector<8x1xi32>
    %13 = vector.broadcast %12 : vector<8x1xi32> to vector<8x8xi32>
    %14 = vector.broadcast %5 : vector<1x8xi32> to vector<8x8xi32>
    %15 = arith.cmpi eq, %13, %14 : vector<8x8xi32>
    %c0_11 = arith.constant 0 : index
    %c0_12 = arith.constant 0 : index
    %16 = vector.load %arg9[%c0_11, %c0_12] : memref<8x1xf32, #tpu.memory_space<vmem>>, vector<8x1xf32>
    %cst_13 = arith.constant -1.000000e+30 : f32
    %17 = vector.broadcast %cst_13 : f32 to vector<8x8xf32>
    %18 = arith.select %15, %11, %17 : vector<8x8xi1>, vector<8x8xf32>
    %cst_14 = arith.constant dense<0xFF800000> : vector<8xf32>
    %19 = vector.multi_reduction <maximumf>, %18, %cst_14 [1] : vector<8x8xf32> to vector<8xf32>
    %20 = vector.shape_cast %19 : vector<8xf32> to vector<8x1xf32>
    %21 = arith.maximumf %16, %20 : vector<8x1xf32>
    %c0_15 = arith.constant 0 : index
    %c0_16 = arith.constant 0 : index
    %22 = vector.load %arg9[%c0_15, %c0_16] : memref<8x1xf32, #tpu.memory_space<vmem>>, vector<8x1xf32>
    tpu.vector_store %arg9[%c0_15, %c0_16], %21 {strides = array<i32>} : memref<8x1xf32, #tpu.memory_space<vmem>>, vector<8x1xf32>,
    %c0_17 = arith.constant 0 : index
    %c0_18 = arith.constant 0 : index
    %23 = vector.load %arg10[%c0_17, %c0_18] : memref<8x1xf32, #tpu.memory_space<vmem>>, vector<8x1xf32>
    %cst_19 = arith.constant 1.000000e+30 : f32
    %24 = vector.broadcast %cst_19 : f32 to vector<8x8xf32>
    %25 = arith.select %15, %24, %11 : vector<8x8xi1>, vector<8x8xf32>
    %cst_20 = arith.constant dense<0x7F800000> : vector<8xf32>
    %26 = vector.multi_reduction <minimumf>, %25, %cst_20 [1] : vector<8x8xf32> to vector<8xf32>
    %27 = vector.shape_cast %26 : vector<8xf32> to vector<8x1xf32>
    %28 = arith.minimumf %23, %27 : vector<8x1xf32>
    %c0_21 = arith.constant 0 : index
    %c0_22 = arith.constant 0 : index
    %29 = vector.load %arg10[%c0_21, %c0_22] : memref<8x1xf32, #tpu.memory_space<vmem>>, vector<8x1xf32>
    tpu.vector_store %arg10[%c0_21, %c0_22], %28 {strides = array<i32>} : memref<8x1xf32, #tpu.memory_space<vmem>>, vector<8x1xf32>,
    %c0_i32_23 = arith.constant 0 : i32
    %30 = arith.cmpi eq, %arg1, %c0_i32_23 : i32
    %31 = arith.extui %30 : i1 to i32
    %c0_i32_24 = arith.constant 0 : i32
    %32 = arith.cmpi ne, %31, %c0_i32_24 : i32
    scf.if %32 {
      %c0_25 = arith.constant 0 : index
      %c0_26 = arith.constant 0 : index
      %33 = vector.load %arg4[%c0_25, %c0_26] : memref<8x1xf32, #tpu.memory_space<vmem>>, vector<8x1xf32>
      %c0_27 = arith.constant 0 : index
      %c0_28 = arith.constant 0 : index
      %34 = vector.load %arg9[%c0_27, %c0_28] : memref<8x1xf32, #tpu.memory_space<vmem>>, vector<8x1xf32>
      %35 = arith.addf %34, %33 : vector<8x1xf32>
      %cst_29 = arith.constant 9.99999996E-13 : f32
      %36 = vector.broadcast %cst_29 : f32 to vector<8x1xf32>
      %37 = arith.maximumf %35, %36 : vector<8x1xf32>
      %38 = math.sqrt %37 : vector<8x1xf32>
      %c0_30 = arith.constant 0 : index
      %c0_31 = arith.constant 0 : index
      %39 = vector.load %arg10[%c0_30, %c0_31] : memref<8x1xf32, #tpu.memory_space<vmem>>, vector<8x1xf32>
      %40 = arith.addf %39, %33 : vector<8x1xf32>
      %cst_32 = arith.constant 9.99999996E-13 : f32
      %41 = vector.broadcast %cst_32 : f32 to vector<8x1xf32>
      %42 = arith.maximumf %40, %41 : vector<8x1xf32>
      %43 = math.sqrt %42 : vector<8x1xf32>
      %44 = arith.subf %38, %43 : vector<8x1xf32>
      %cst_33 = arith.constant 3.000000e-01 : f32
      %45 = vector.broadcast %cst_33 : f32 to vector<8x1xf32>
      %46 = arith.addf %44, %45 : vector<8x1xf32>
      %cst_34 = arith.constant 0.000000e+00 : f32
      %47 = vector.broadcast %cst_34 : f32 to vector<8x1xf32>
      %48 = arith.maximumf %46, %47 : vector<8x1xf32>
      %c0_35 = arith.constant 0 : index
      %c0_36 = arith.constant 0 : index
      %49 = vector.load %arg8[%c0_35, %c0_36] : memref<8x1xf32, #tpu.memory_space<vmem>>, vector<8x1xf32>
      tpu.vector_store %arg8[%c0_35, %c0_36], %48 {strides = array<i32>} : memref<8x1xf32, #tpu.memory_space<vmem>>, vector<8x1xf32>,
    } else {
    }
    return
  }
  func.func @transform_0(%arg0: i32, %arg1: i32) -> (i32, i32) {
    %c0_i32 = arith.constant 0 : i32
    %c0_i32_0 = arith.constant 0 : i32
    return %arg0, %c0_i32 : i32, i32
  }
  func.func @transform_1(%arg0: i32, %arg1: i32) -> (i32, i32) {
    %c0_i32 = arith.constant 0 : i32
    %c0_i32_0 = arith.constant 0 : i32
    %c0_i32_1 = arith.constant 0 : i32
    return %c0_i32, %c0_i32_0 : i32, i32
  }
  func.func @transform_2(%arg0: i32, %arg1: i32) -> (i32, i32) {
    %c0_i32 = arith.constant 0 : i32
    %c0_i32_0 = arith.constant 0 : i32
    return %arg0, %c0_i32 : i32, i32
  }
  func.func @transform_3(%arg0: i32, %arg1: i32) -> (i32, i32) {
    %c0_i32 = arith.constant 0 : i32
    %c0_i32_0 = arith.constant 0 : i32
    %c0_i32_1 = arith.constant 0 : i32
    return %c0_i32, %c0_i32_0 : i32, i32
  }
  func.func @transform_4(%arg0: i32, %arg1: i32) -> (i32, i32) {
    %c0_i32 = arith.constant 0 : i32
    %c0_i32_0 = arith.constant 0 : i32
    return %arg0, %c0_i32 : i32, i32
  }
  func.func @transform_5(%arg0: i32, %arg1: i32) -> (i32, i32) {
    %c0_i32 = arith.constant 0 : i32
    %c0_i32_0 = arith.constant 0 : i32
    %c0_i32_1 = arith.constant 0 : i32
    return %c0_i32, %c0_i32_0 : i32, i32
  }
  func.func @transform_6(%arg0: i32, %arg1: i32) -> (i32, i32) {
    %c0_i32 = arith.constant 0 : i32
    %c0_i32_0 = arith.constant 0 : i32
    return %arg0, %c0_i32 : i32, i32
  }
}

</mosaic_0001>

<bundles_post_ra>
// kernel: tpu_custom_call.1
= control target key start
LH: loop header
LB: loop body
LE: loop exit
PB: predicated region body
PF: predicated region fallthrough
CT: control target
= control target key end

     0   :  { %v273_v0 = vmov 0.0|0.0   ;;  %vm274_vm0 = vmmov 0   ;;  %v275_v4 = vmov 0.0   ;;  %v276_v7 = vmov 0   ;;  %s385_s1 = inlined_call_operand.vmem [shape: f32[128,8], index: 1, kind: input, shape index: {}]   ;;  %s386_s4 = inlined_call_operand.vmem [shape: s32[8,1], index: 4, kind: input, shape index: {}]   ;;  %s387_s0 = inlined_call_operand.vmem [shape: f32[8,128], index: 0, kind: input, shape index: {}]   ;;  %s388_s5 = inlined_call_operand.vmem [shape: s32[1,8], index: 5, kind: input, shape index: {}]   ;;  %s389_s3 = inlined_call_operand.vmem [shape: f32[1,8], index: 3, kind: input, shape index: {}]   ;;  %s390_s2 = inlined_call_operand.vmem [shape: f32[8,1], index: 2, kind: input, shape index: {}]   ;;  %s391_s6 = inlined_call_operand.vmem [shape: f32[8,1], index: 6, kind: output, shape index: {}]  }
   0x1   :  { %238 = vmatprep.subr.bf16.mxu0 %v273_v0  ;;  %v30_v1 = vld [vmem:[%s385_s1] sm:$0xff]  ;;  %v31_v2 = vld [vmem:[%s385_s1 + $0x8] sm:$0xff]  ;;  %v32_v3 = vld [vmem:[%s385_s1 + $0x10] sm:$0xff]  ;;  %235 = vmatprep.mubr.msk.f32.mxu0 %vm274_vm0, %v275_v4  ;;  %vm27_vm1 = vcmask 7168   ;;  %v277_v29 = vmov 1e+30  }
   0x2   :  { %v239_v5 = vpack.c.bf16 %v31_v2, %v30_v1  ;;  %v33_v6 = vld [vmem:[%s385_s1 + $0x18] sm:$0xff]  ;;  %268 = vset.pattern.permute.xlu0 %v276_v7  ;;  %v34_v9 = vld [vmem:[%s385_s1 + $0x20] sm:$0xff]  ;;  %v35_v10 = vld [vmem:[%s385_s1 + $0x28] sm:$0xff]  ;;  %29 = vst.msk [vmem:[#allocation3] sm:$0xff] %vm27_vm1, %v277_v29  ;;  %vm138_vm3 = vcmask 64512  }
   0x3   :  { %v242_v8 = vpack.c.bf16 %v33_v6, %v32_v3  ;;  %v127_v11 = vld [vmem:[%s386_s4] sm:$0xff]  ;;  %v245_v12 = vpack.c.bf16 %v35_v10, %v34_v9  ;;  %v36_v13 = vld [vmem:[%s385_s1 + $0x30] sm:$0xff]  ;;  %v37_v14 = vld [vmem:[%s385_s1 + $0x38] sm:$0xff]  ;;  %v278_v41 = vmov -1e+30  }
   0x4   :  { %240 = vmatpush3.bf16.msra.mxu0 %v239_v5  ;;  %129 = vperm.xlu0 %268, %v127_v11   ;;  %v248_v15 = vpack.c.bf16 %v37_v14, %v36_v13  ;;  %v38_v16 = vld [vmem:[%s385_s1 + $0x40] sm:$0xff]  ;;  %v39_v17 = vld [vmem:[%s385_s1 + $0x48] sm:$0xff]  ;;  %v40_v19 = vld [vmem:[%s385_s1 + $0x50] sm:$0xff]  ;;  %28 = vst.msk [vmem:[#allocation2] sm:$0xff] %vm27_vm1, %v278_v41 }
   0x5   :  { %241 = vmatprep.subr.bf16.mxu0 %v273_v0  ;;  %v251_v18 = vpack.c.bf16 %v39_v17, %v38_v16  ;;  %v41_v20 = vld [vmem:[%s385_s1 + $0x58] sm:$0xff]  ;;  %v42_v22 = vld [vmem:[%s385_s1 + $0x60] sm:$0xff]  ;;  %v43_v23 = vld [vmem:[%s385_s1 + $0x68] sm:$0xff] }
   0x6   :  { %v254_v21 = vpack.c.bf16 %v41_v20, %v40_v19  ;;  %v257_v24 = vpack.c.bf16 %v43_v23, %v42_v22  ;;  %v44_v25 = vld [vmem:[%s385_s1 + $0x70] sm:$0xff]  ;;  %v45_v26 = vld [vmem:[%s385_s1 + $0x78] sm:$0xff]  ;;  %v48_v28 = vld [vmem:[%s387_s0] sm:$0xff] }
   0x7   :  { %v260_v27 = vpack.c.bf16 %v45_v26, %v44_v25  ;;  %v185_v30 = vld [vmem:[%s388_s5] ss:$0 sm:$0xff] }
   0x8   :  { %243 = vmatpush3.bf16.msra.mxu0 %v242_v8  ;;  %v184_v32 = vld [vmem:[%s389_s3] ss:$0 sm:$0xff] }
   0x9   :  { %244 = vmatprep.subr.bf16.mxu0 %v273_v0  ;;  %v145_v42 = vld [vmem:[#allocation3] sm:$0xff]  ;;  %v155_v48 = vld [vmem:[%s390_s2] sm:$0xff] }
   0xb   :  { %v136_v43 = vld [vmem:[#allocation2] sm:$0xff] }
   0xc   :  { %246 = vmatpush3.bf16.msra.mxu0 %v245_v12 }
   0xd   :  { %247 = vmatprep.subr.bf16.mxu0 %v273_v0 }
  0x10   :  { %249 = vmatpush3.bf16.msra.mxu0 %v248_v15 }
  0x11   :  { %250 = vmatprep.subr.bf16.mxu0 %v273_v0 }
  0x14   :  { %252 = vmatpush3.bf16.msra.mxu0 %v251_v18 }
  0x15   :  { %253 = vmatprep.subr.bf16.mxu0 %v273_v0 }
  0x18   :  { %255 = vmatpush3.bf16.msra.mxu0 %v254_v21 }
  0x19   :  { %256 = vmatprep.subr.bf16.mxu0 %v273_v0 }
  0x1c   :  { %258 = vmatpush3.bf16.msra.mxu0 %v257_v24 }
  0x1d   :  { %259 = vmatprep.subr.bf16.mxu0 %v273_v0 }
  0x20   :  { %261 = vmatpush3.bf16.msra.mxu0 %v260_v27 }
  0x23   :  { %236 = vmatmul.mubr.f32.vlgmr.msra.gmra.mrb[0].mxu0 %v48_v28 }
  0x83   :  { %v130_v31 = vpop.permute.xlu0 %129 }
  0x84   :  { %vm135_vm2 = vcmp.eq.s32.totalorder %v130_v31, %v185_v30 }
  0xf6   :  { %v115_v33 = vpop.f32.mrb[0].mxu0 }
  0xf7   :  { %v119_v34 = vmul.f32 2.0, %v115_v33  ;;  %v237_v35 = vpop.f32.mrb[1].mxu0 }
  0xf9   :  { %v126_v36 = vsub.f32 %v184_v32, %v119_v34 }
  0xfb   :  { %v146_v37 = vsel %vm135_vm2, 1e+30, %v126_v36  ;;  %v137_v38 = vsel %vm135_vm2, %v126_v36, -1e+30 }
  0xfc   :  { %v147_v39 = vsel %vm138_vm3, %v146_v37, inf  ;;  %v139_v40 = vsel %vm138_vm3, %v137_v38, -inf }
  0xfd   :  { %148 = vmin.xlane.f32.xlu1 %v147_v39  ;;  %140 = vmax.xlane.f32.xlu0 %v139_v40 }
 0x18a   :  { %v149_v44 = vpop.xlane.xlu1 %148  ;;  %v141_v45 = vpop.xlane.xlu0 %140 }
 0x18b   :  { %v150_v46 = vmin.f32 %v145_v42, %v149_v44  ;;  %v142_v47 = vmax.f32 %v136_v43, %v141_v45 }
 0x18d   :  { %151 = vst.msk [vmem:[#allocation3] sm:$0xff] %vm27_vm1, %v150_v46  ;;  %144 = vst.msk [vmem:[#allocation2] sm:$0xff] %vm27_vm1, %v142_v47 }
 0x194   :  { %v166_v49 = vld [vmem:[#allocation3] sm:$0xff]  ;;  %v156_v50 = vld [vmem:[#allocation2] sm:$0xff] }
 0x195   :  { %v167_v51 = vadd.f32 %v166_v49, %v155_v48  ;;  %v157_v52 = vadd.f32 %v156_v50, %v155_v48 }
 0x197   :  { %v168_v53 = vmax.f32 %v167_v51, 1e-12  ;;  %v158_v54 = vmax.f32 %v157_v52, 1e-12 }
 0x199   :  { %269 = vrsqrt.f32 %v168_v53  ;;  %vm171_vm4 = vcmp.eq.f32.partialorder %v168_v53, inf  ;;  %v174_v58 = vand.u32 2147483648, %v168_v53  ;;  %vm173_vm5 = vcmp.eq.f32.partialorder %v168_v53, 0.0 }
 0x19a   :  { %271 = vrsqrt.f32 %v158_v54  ;;  %vm161_vm6 = vcmp.eq.f32.partialorder %v158_v54, inf  ;;  %v164_v61 = vand.u32 2147483648, %v158_v54  ;;  %vm163_vm7 = vcmp.eq.f32.partialorder %v158_v54, 0.0 }
 0x1a3   :  { %v270_v55 = vpop.eup %269 }
 0x1a4   :  { %v272_v56 = vpop.eup %271  ;;  %v170_v57 = vmul.f32 %v270_v55, %v168_v53 }
 0x1a5   :  { %v160_v59 = vmul.f32 %v272_v56, %v158_v54 }
 0x1a6   :  { %v172_v60 = vsel %vm171_vm4, %v168_v53, %v170_v57 }
 0x1a7   :  { %v175_v62 = vsel %vm173_vm5, %v174_v58, %v172_v60  ;;  %v162_v63 = vsel %vm161_vm6, %v158_v54, %v160_v59 }
 0x1a8   :  { %v165_v0 = vsel %vm163_vm7, %v164_v61, %v162_v63 }
 0x1a9   :  { %v176_v1 = vsub.f32 %v165_v0, %v175_v62 }
 0x1ab   :  { %v177_v2 = vadd.f32 0.3, %v176_v1 }
 0x1ad   :  { %v178_v3 = vmax.f32 %v177_v2, 0.0 }
 0x1af   :  { %179 = vst.msk [vmem:[%s391_s6] sm:$0xff] %vm27_vm1, %v178_v3 }

</bundles_post_ra>
